<compile_context>
chip_gen: v7x
topology: tpu7x:2x2x1
jax: 0.10.0
libtpu: 0.0.40
codegen_flags: <defaults>
</compile_context>

<pallas_src>
import jax
import jax.numpy as jnp
import numpy as np
from jax.experimental import pallas as pl
from jax.experimental.pallas import tpu as pltpu

_SUB = 8      # sublane tile
_LANE = 128   # lane tile
_NEG_BIG = -1e30


def _pick_tile_n(n, ct, itemsize):
    """Sample-axis tile: ~2 MiB primary block, dtype-aware sublane multiple, <=2048."""
    sub = max(_SUB, 32 // max(int(itemsize), 1))       # 8 (f32) / 16 (bf16) / 32 (int8)
    budget_bytes = 2 * 1024 * 1024
    tn = (budget_bytes // (max(ct, 1) * itemsize)) // sub * sub
    tn = max(sub, min(2048, int(tn)))
    n_r = -(-n // sub) * sub
    return max(sub, min(tn, n_r))


def _make_seesaw_kernel(tile_n, ct, c, n_rows, tiles_per_core, p, q, eps):
    """Kernel body. Static config (tile_n, ct=c+2, c, n_rows, tiles_per_core, p, q, eps)
    is closed over."""
    p = float(p)
    q = float(q)
    log_eps = float(np.log(eps))

    def kernel(x_ref, aux_ref, const_ref, out_ref):
        core = pl.program_id(0)     # "parallel" axis (2-way on v7x, 1 elsewhere)
        it = pl.program_id(1)       # "arbitrary" accumulation axis over sample tiles

        @pl.when(it == 0)
        def _init():
            out_ref[...] = jnp.zeros_like(out_ref)

        # Logical tile index (block index was clamped in the index_map for overflow
        # tiles, but the row-validity mask below uses the *logical* index, so clamped
        # re-loads contribute exactly zero).
        tile = core * tiles_per_core + it
        row0 = tile * tile_n

        xf = x_ref[...].astype(jnp.float32)               # [TN, CT] (native dtype DMA)
        labels = aux_ref[:, 0:1].astype(jnp.int32)        # [TN, 1]
        w = aux_ref[:, 1:2]                               # [TN, 1] f32 label weights

        log_cum = const_ref[0:1, :]       # [1, CT] log(max(cum,1)); 0 in objectness lanes
        lane_bias = const_ref[1:2, :]     # [1, CT] 0 in class lanes, -1e30 in obj lanes

        row = jax.lax.broadcasted_iota(jnp.int32, (tile_n, 1), 0)
        row_valid = (row0 + row) < n_rows                  # mask partial / overflow tiles
        pos_b = (labels < c) & row_valid                   # foreground rows, valid only
        col = jax.lax.broadcasted_iota(jnp.int32, (tile_n, ct), 1)
        onehot_b = (col == labels) & pos_b                 # bg / invalid rows: all False

        cls = xf + lane_bias                               # obj lanes pushed to ~-1e30

        # ---- log-softmax over class lanes (exp pass #1) ----
        m = jnp.max(cls, axis=1, keepdims=True)
        log_z = m + jnp.log(jnp.sum(jnp.exp(cls - m), axis=1, keepdims=True))

        # label-column logit doubles as the CE target (seesaw term zeroed at label col)
        tgt = jnp.sum(jnp.where(onehot_b, xf, 0.0), axis=1, keepdims=True)
        log_cum_label = jnp.sum(jnp.where(onehot_b, log_cum, 0.0), axis=1, keepdims=True)
        # log softmax at the label column, clamped at log(eps); 0 for bg/invalid rows.
        log_self = jnp.maximum(jnp.where(pos_b, tgt - log_z, 0.0), log_eps)

        # ---- seesaw weight in log domain, folded straight into the modified logits ----
        #   log(mitigation)   = p * min(log_cum[j] - log_cum[label], 0)
        #   log(compensation) = q * max(log_softmax[j] - log_self,   0)
        log_w = (p * jnp.minimum(log_cum - log_cum_label, 0.0)
                 + q * jnp.maximum((cls - log_z) - log_self, 0.0))
        mod = jnp.where(onehot_b, cls, cls + log_w)

        # ---- cross-entropy on modified logits (exp pass #2) ----
        m2 = jnp.max(mod, axis=1, keepdims=True)
        lse = m2 + jnp.log(jnp.sum(jnp.exp(mod - m2), axis=1, keepdims=True))
        ce_cls = lse - tgt                                 # [TN, 1]

        # ---- 2-way objectness CE from static lane slices (no cross-lane reductions) ----
        o0 = x_ref[:, c:c + 1].astype(jnp.float32)         # foreground logit
        o1 = x_ref[:, c + 1:c + 2].astype(jnp.float32)     # background logit
        lse_o = jnp.maximum(o0, o1) + jnp.log1p(jnp.exp(-jnp.abs(o0 - o1)))
        tgt_o = jnp.where(labels == c, o1, o0)
        ce_obj = lse_o - tgt_o

        # Row-gated partial sums (where-gating: garbage rows never pollute, even if NaN).
        s_cls = jnp.sum(jnp.where(pos_b, ce_cls * w, 0.0))
        s_obj = jnp.sum(jnp.where(row_valid, ce_obj * w, 0.0))
        s_npos = jnp.sum(jnp.where(pos_b, 1.0, 0.0))

        # Pack the 3 scalars into lanes 0/1/2 of a lane-dense [8,128] block and accumulate.
        lane8 = jax.lax.broadcasted_iota(jnp.int32, (_SUB, _LANE), 1)
        packed = (jnp.where(lane8 == 0, s_cls, 0.0)
                  + jnp.where(lane8 == 1, s_obj, 0.0)
                  + jnp.where(lane8 == 2, s_npos, 0.0))
        out_ref[...] += packed

    return kernel


class SeesawLossPallas:
    """JAX/Pallas port of mmdet SeesawLoss (use_sigmoid=False, reduction='mean').

    cum_samples is the registered buffer (num_classes + 1,), init to zeros.
    """

    def __init__(self, p=0.8, q=2.0, num_classes=126, eps=0.01,
                 loss_weight=1.0, return_dict=True, tile_n=None):
        self.p = float(p)
        self.q = float(q)
        self.num_classes = int(num_classes)
        self.eps = float(eps)
        self.loss_weight = float(loss_weight)
        self.return_dict = return_dict
        self.tile_n = tile_n
        self.cum_samples = jnp.zeros(self.num_classes + 1, dtype=jnp.float32)
        # TODO(synk): only reduction='mean' with avg_factor=None is implemented
        # (no reduction_override / avg_factor paths); get_activation/get_accuracy
        # helpers are not part of forward and are not ported.

    def _pallas_core(self, x, aux, const, tn):
        n, ct = x.shape
        itemsize = int(jnp.dtype(x.dtype).itemsize)
        num_tiles = -(-n // tn)
        ncores = 2 if num_tiles >= 2 else 1          # keep both TCs busy on v7x
        tiles_per_core = -(-num_tiles // ncores)

        kernel = _make_seesaw_kernel(tn, ct, self.num_classes, n, tiles_per_core,
                                     self.p, self.q, self.eps)

        def data_map(cc, i):
            # Clamp overflow tiles of the last core; they are fully masked in-kernel.
            return (jnp.minimum(cc * tiles_per_core + i, num_tiles - 1), 0)

        cost = pl.CostEstimate(
            flops=int(30 * n * ct),
            transcendentals=int(2 * n * ct + 6 * n),
            bytes_accessed=int(n * ct * itemsize + n * 2 * 4 + 8 * ct * 4
                               + ncores * _SUB * _LANE * 4),
        )

        out = pl.pallas_call(
            kernel,
            out_shape=jax.ShapeDtypeStruct((ncores * _SUB, _LANE), jnp.float32),
            grid=(ncores, tiles_per_core),
            in_specs=[
                pl.BlockSpec((tn, ct), data_map),               # logits, native dtype
                pl.BlockSpec((tn, 2), data_map),                # [label_f32, weight]
                pl.BlockSpec((_SUB, ct), lambda cc, i: (0, 0)),  # per-class constants
            ],
            out_specs=pl.BlockSpec((_SUB, _LANE), lambda cc, i: (cc, 0)),
            compiler_params=pltpu.CompilerParams(
                dimension_semantics=("parallel", "arbitrary"),
                vmem_limit_bytes=32 * 1024 * 1024),
            cost_estimate=cost,
        )(x, aux, const)
        return out

    def __call__(self, cls_score, labels, label_weights=None):
        n = int(cls_score.shape[0])
        c = self.num_classes
        ct = c + 2
        assert cls_score.shape[-1] == ct

        labels = labels.astype(jnp.int32)
        if label_weights is None:
            label_weights = jnp.ones((n,), dtype=jnp.float32)
        else:
            label_weights = label_weights.astype(jnp.float32)

        # cum_samples buffer update (histogram over labels, incl. background bin c).
        # TODO(synk): Python-attribute buffer mutation is not jit/grad-safe; thread
        # cum_samples functionally for a traced training loop.
        hist = jnp.zeros(c + 1, jnp.float32).at[labels].add(1.0)
        self.cum_samples = self.cum_samples + hist

        if n == 0:
            # TODO(synk): empty-batch path mirrors "no positives" -> zero losses.
            zero = jnp.float32(0.0)
            if self.return_dict:
                return {'loss_cls_objectness': zero, 'loss_cls_classes': zero}
            return zero

        # Hoisted per-class constants, one lane-dense (8, ct) block:
        #   row 0: log(max(cum,1)) (0 in the 2 objectness lanes)
        #   row 1: lane bias (0 in class lanes, -1e30 in objectness lanes)
        log_cum = jnp.log(jnp.maximum(self.cum_samples[:c], 1.0))
        const = jnp.zeros((_SUB, ct), jnp.float32)
        const = const.at[0, :c].set(log_cum)
        const = const.at[1, c:].set(jnp.float32(_NEG_BIG))

        # Labels + weights merged into one narrow aux input (labels exact in f32).
        aux = jnp.stack([labels.astype(jnp.float32), label_weights], axis=1)  # [n, 2]

        itemsize = int(jnp.dtype(cls_score.dtype).itemsize)
        sub = max(_SUB, 32 // max(itemsize, 1))
        if self.tile_n is not None:
            tn = max(sub, min(2048, (int(self.tile_n) // sub) * sub))
        else:
            tn = _pick_tile_n(n, ct, itemsize)

        out = self._pallas_core(cls_score, aux, const, tn)   # no host-side upcast/pad

        sum_cls = jnp.sum(out[::_SUB, 0])
        sum_obj = jnp.sum(out[::_SUB, 1])
        npos = jnp.sum(out[::_SUB, 2])

        # reduction='mean', avg_factor=None:
        #   classes loss is a mean over positive samples only,
        #   objectness loss is a mean over all samples.
        loss_cls_classes = jnp.where(
            npos > 0,
            self.loss_weight * sum_cls / jnp.maximum(npos, 1.0),
            jnp.float32(0.0))
        loss_cls_objectness = self.loss_weight * sum_obj / jnp.float32(n)

        if self.return_dict:
            return {'loss_cls_objectness': loss_cls_objectness,
                    'loss_cls_classes': loss_cls_classes}
        return loss_cls_classes + loss_cls_objectness


# -------------------- pure-JAX reference (mirrors PyTorch semantics) ----------
def _reference(cls_score, labels, label_weights, cum_after, C, p, q, eps, lw):
    clsc = cls_score[:, :C]
    obj = cls_score[:, C:]
    pos = (labels < C)
    npos = jnp.sum(pos.astype(jnp.float32))
    onehot = jax.nn.one_hot(labels, C, dtype=jnp.float32)

    cum = jnp.maximum(cum_after[:C], 1.0)
    cum_l = jnp.maximum(jnp.sum(onehot * cum[None, :], axis=1, keepdims=True), 1.0)
    ratio = cum[None, :] / cum_l
    idx = (ratio < 1.0).astype(jnp.float32)
    mit = ratio ** p * idx + (1 - idx)

    scores = jax.nn.softmax(clsc, axis=1)
    self_sc = jnp.maximum(jnp.sum(onehot * scores, axis=1, keepdims=True), eps)
    sm = scores / self_sc
    idx2 = (sm > 1.0).astype(jnp.float32)
    comp = sm ** q * idx2 + (1 - idx2)

    mod = clsc + jnp.log(mit * comp) * (1 - onehot)
    logp = jax.nn.log_softmax(mod, axis=1)
    ce = -jnp.sum(onehot * logp, axis=1)
    loss_classes = jnp.where(
        npos > 0,
        lw * jnp.sum(ce * label_weights * pos) / jnp.maximum(npos, 1.0),
        0.0)

    obj_lab = (labels == C).astype(jnp.int32)
    logp_o = jax.nn.log_softmax(obj, axis=1)
    ce_o = -jnp.sum(jax.nn.one_hot(obj_lab, 2) * logp_o, axis=1)
    loss_obj = lw * jnp.mean(ce_o * label_weights)
    return loss_classes, loss_obj


if __name__ == "__main__":
    N = 20           # number of ROI samples (exercises partial tiles + masking)
    C = 126          # num_classes -> cls channels = C + 2 = 128 (lane-dense)

    key = jax.random.PRNGKey(0)
    k1, k2, k3 = jax.random.split(key, 3)
    cls_score = jax.random.normal(k1, (N, C + 2), dtype=jnp.float32) * 2.0
    labels = jax.random.randint(k2, (N,), 0, C + 1).astype(jnp.int32)
    labels = labels.at[-1].set(C)   # ensure at least one background sample
    label_weights = jax.random.uniform(k3, (N,), jnp.float32, 0.5, 1.5)

    # 1) tiny explicit tile -> multi-tile grid, 2-way core split, clamped tail tile
    m1 = SeesawLossPallas(p=0.8, q=2.0, num_classes=C, eps=0.01,
                          loss_weight=1.0, return_dict=True, tile_n=8)
    out1 = m1(cls_score, labels, label_weights)
    jax.block_until_ready(out1)
    ref_cls, ref_obj = _reference(cls_score, labels, label_weights,
                                  m1.cum_samples, C, 0.8, 2.0, 0.01, 1.0)
    np.testing.assert_allclose(np.asarray(out1['loss_cls_classes']),
                               np.asarray(ref_cls), rtol=2e-3, atol=1e-4)
    np.testing.assert_allclose(np.asarray(out1['loss_cls_objectness']),
                               np.asarray(ref_obj), rtol=2e-3, atol=1e-4)

    # 2) auto tile (single partial block covering all rows)
    m2 = SeesawLossPallas(p=0.8, q=2.0, num_classes=C, eps=0.01)
    out2 = m2(cls_score, labels, label_weights)
    jax.block_until_ready(out2)
    np.testing.assert_allclose(np.asarray(out2['loss_cls_classes']),
                               np.asarray(ref_cls), rtol=2e-3, atol=1e-4)
    np.testing.assert_allclose(np.asarray(out2['loss_cls_objectness']),
                               np.asarray(ref_obj), rtol=2e-3, atol=1e-4)

    # 3) native bf16 logits: DMA'd without host-side upcast; kernel upcasts after load
    x_bf16 = cls_score.astype(jnp.bfloat16)
    m3 = SeesawLossPallas(p=0.8, q=2.0, num_classes=C, eps=0.01)
    out3 = m3(x_bf16, labels, label_weights)
    jax.block_until_ready(out3)
    ref_cls_b, ref_obj_b = _reference(x_bf16.astype(jnp.float32), labels, label_weights,
                                      m3.cum_samples, C, 0.8, 2.0, 0.01, 1.0)
    np.testing.assert_allclose(np.asarray(out3['loss_cls_classes']),
                               np.asarray(ref_cls_b), rtol=2e-3, atol=1e-4)
    np.testing.assert_allclose(np.asarray(out3['loss_cls_objectness']),
                               np.asarray(ref_obj_b), rtol=2e-3, atol=1e-4)

    print("KERNEL_OK")
</pallas_src>

<mosaic_0001>
module attributes {stable_mosaic.version = 11 : i64} {
  func.func @kernel(%arg0: i32, %arg1: i32, %arg2: memref<8x128xf32, #tpu.memory_space<vmem>>, %arg3: memref<8x2xf32, #tpu.memory_space<vmem>>, %arg4: memref<8x128xf32, #tpu.memory_space<vmem>>, %arg5: memref<8x128xf32, #tpu.memory_space<vmem>>) attributes {dimension_semantics = [#tpu.dimension_semantics<parallel>, #tpu.dimension_semantics<arbitrary>], iteration_bounds = array<i64: 2, 2>, scalar_prefetch = 0 : i64, scratch_operands = 0 : i64, tpu.core_type = #tpu.core_type<tc>, window_params = [{transform_indices = @transform_0, window_bounds = array<i64: 8, 128>}, {transform_indices = @transform_1, window_bounds = array<i64: 8, 2>}, {pipeline_mode = #tpu.pipeline_mode<synchronous>, transform_indices = @transform_2, window_bounds = array<i64: 8, 128>}, {transform_indices = @transform_3, window_bounds = array<i64: 8, 128>}]} {
    %c0_i32 = arith.constant 0 : i32
    %0 = arith.cmpi eq, %arg1, %c0_i32 : i32
    %1 = arith.extui %0 : i1 to i32
    %c0_i32_0 = arith.constant 0 : i32
    %2 = arith.cmpi ne, %1, %c0_i32_0 : i32
    scf.if %2 {
      %cst_42 = arith.constant 0.000000e+00 : f32
      %135 = vector.broadcast %cst_42 : f32 to vector<8x128xf32>
      %c0_43 = arith.constant 0 : index
      %c0_44 = arith.constant 0 : index
      %136 = vector.load %arg5[%c0_43, %c0_44] : memref<8x128xf32, #tpu.memory_space<vmem>>, vector<8x128xf32>
      tpu.vector_store %arg5[%c0_43, %c0_44], %135 {strides = array<i32>} : memref<8x128xf32, #tpu.memory_space<vmem>>, vector<8x128xf32>,
    } else {
    }
    %c2_i32 = arith.constant 2 : i32
    %3 = arith.muli %arg0, %c2_i32 : i32
    %4 = arith.addi %3, %arg1 : i32
    %c8_i32 = arith.constant 8 : i32
    %5 = arith.muli %4, %c8_i32 : i32
    %c0 = arith.constant 0 : index
    %c0_1 = arith.constant 0 : index
    %6 = vector.load %arg2[%c0, %c0_1] : memref<8x128xf32, #tpu.memory_space<vmem>>, vector<8x128xf32>
    %c0_2 = arith.constant 0 : index
    %c0_3 = arith.constant 0 : index
    %7 = vector.load %arg3[%c0_2, %c0_3] : memref<8x2xf32, #tpu.memory_space<vmem>>, vector<8x1xf32>
    %8 = arith.fptosi %7 : vector<8x1xf32> to vector<8x1xi32>
    %c0_4 = arith.constant 0 : index
    %c1 = arith.constant 1 : index
    %9 = vector.load %arg3[%c0_4, %c1] : memref<8x2xf32, #tpu.memory_space<vmem>>, vector<8x1xf32>
    %c0_5 = arith.constant 0 : index
    %c0_6 = arith.constant 0 : index
    %10 = vector.load %arg4[%c0_5, %c0_6] : memref<8x128xf32, #tpu.memory_space<vmem>>, vector<1x128xf32>
    %c1_7 = arith.constant 1 : index
    %c0_8 = arith.constant 0 : index
    %11 = vector.load %arg4[%c1_7, %c0_8] : memref<8x128xf32, #tpu.memory_space<vmem>>, vector<1x128xf32>
    %12 = tpu.iota {dimensions = array<i32: 0>} : vector<8x1xi32>
    %13 = vector.broadcast %5 : i32 to vector<8x1xi32>
    %14 = arith.addi %13, %12 : vector<8x1xi32>
    %c20_i32 = arith.constant 20 : i32
    %15 = vector.broadcast %c20_i32 : i32 to vector<8x1xi32>
    %16 = arith.cmpi slt, %14, %15 : vector<8x1xi32>
    %c126_i32 = arith.constant 126 : i32
    %17 = vector.broadcast %c126_i32 : i32 to vector<8x1xi32>
    %18 = arith.cmpi slt, %8, %17 : vector<8x1xi32>
    %19 = arith.andi %18, %16 : vector<8x1xi1>
    %20 = tpu.iota {dimensions = array<i32: 1>} : vector<8x128xi32>
    %21 = vector.broadcast %8 : vector<8x1xi32> to vector<8x128xi32>
    %22 = arith.cmpi eq, %20, %21 : vector<8x128xi32>
    %23 = vector.broadcast %19 : vector<8x1xi1> to vector<8x128xi1>
    %24 = arith.andi %22, %23 : vector<8x128xi1>
    %25 = vector.broadcast %11 : vector<1x128xf32> to vector<8x128xf32>
    %26 = arith.addf %6, %25 : vector<8x128xf32>
    %cst = arith.constant dense<0xFF800000> : vector<8xf32>
    %27 = vector.multi_reduction <maximumf>, %26, %cst [1] : vector<8x128xf32> to vector<8xf32>
    %28 = vector.shape_cast %27 : vector<8xf32> to vector<8x1xf32>
    %29 = vector.broadcast %28 : vector<8x1xf32> to vector<8x128xf32>
    %30 = arith.subf %26, %29 : vector<8x128xf32>
    %31 = math.exp %30 : vector<8x128xf32>
    %cst_9 = arith.constant dense<0.000000e+00> : vector<8xf32>
    %32 = vector.multi_reduction <add>, %31, %cst_9 [1] : vector<8x128xf32> to vector<8xf32>
    %33 = vector.shape_cast %32 : vector<8xf32> to vector<8x1xf32>
    %34 = math.log %33 : vector<8x1xf32>
    %35 = arith.addf %28, %34 : vector<8x1xf32>
    %cst_10 = arith.constant 0.000000e+00 : f32
    %36 = vector.broadcast %cst_10 : f32 to vector<8x128xf32>
    %37 = arith.select %24, %6, %36 : vector<8x128xi1>, vector<8x128xf32>
    %cst_11 = arith.constant dense<0.000000e+00> : vector<8xf32>
    %38 = vector.multi_reduction <add>, %37, %cst_11 [1] : vector<8x128xf32> to vector<8xf32>
    %39 = vector.shape_cast %38 : vector<8xf32> to vector<8x1xf32>
    %cst_12 = arith.constant 0.000000e+00 : f32
    %40 = vector.shape_cast %10 : vector<1x128xf32> to vector<1x128xf32>
    %41 = vector.broadcast %40 : vector<1x128xf32> to vector<8x128xf32>
    %42 = vector.broadcast %cst_12 : f32 to vector<8x128xf32>
    %43 = arith.select %24, %41, %42 : vector<8x128xi1>, vector<8x128xf32>
    %cst_13 = arith.constant dense<0.000000e+00> : vector<8xf32>
    %44 = vector.multi_reduction <add>, %43, %cst_13 [1] : vector<8x128xf32> to vector<8xf32>
    %45 = vector.shape_cast %44 : vector<8xf32> to vector<8x1xf32>
    %46 = arith.subf %39, %35 : vector<8x1xf32>
    %cst_14 = arith.constant 0.000000e+00 : f32
    %47 = vector.broadcast %cst_14 : f32 to vector<8x1xf32>
    %48 = arith.select %19, %46, %47 : vector<8x1xi1>, vector<8x1xf32>
    %cst_15 = arith.constant -4.60517025 : f32
    %49 = vector.broadcast %cst_15 : f32 to vector<8x1xf32>
    %50 = arith.maximumf %48, %49 : vector<8x1xf32>
    %51 = vector.broadcast %10 : vector<1x128xf32> to vector<8x128xf32>
    %52 = vector.broadcast %45 : vector<8x1xf32> to vector<8x128xf32>
    %53 = arith.subf %51, %52 : vector<8x128xf32>
    %cst_16 = arith.constant 0.000000e+00 : f32
    %54 = vector.broadcast %cst_16 : f32 to vector<8x128xf32>
    %55 = arith.minimumf %53, %54 : vector<8x128xf32>
    %cst_17 = arith.constant 8.000000e-01 : f32
    %56 = vector.broadcast %cst_17 : f32 to vector<8x128xf32>
    %57 = arith.mulf %56, %55 : vector<8x128xf32>
    %58 = vector.broadcast %35 : vector<8x1xf32> to vector<8x128xf32>
    %59 = arith.subf %26, %58 : vector<8x128xf32>
    %60 = vector.broadcast %50 : vector<8x1xf32> to vector<8x128xf32>
    %61 = arith.subf %59, %60 : vector<8x128xf32>
    %cst_18 = arith.constant 0.000000e+00 : f32
    %62 = vector.broadcast %cst_18 : f32 to vector<8x128xf32>
    %63 = arith.maximumf %61, %62 : vector<8x128xf32>
    %cst_19 = arith.constant 2.000000e+00 : f32
    %64 = vector.broadcast %cst_19 : f32 to vector<8x128xf32>
    %65 = arith.mulf %64, %63 : vector<8x128xf32>
    %66 = arith.addf %57, %65 : vector<8x128xf32>
    %67 = arith.addf %26, %66 : vector<8x128xf32>
    %68 = arith.select %24, %26, %67 : vector<8x128xi1>, vector<8x128xf32>
    %cst_20 = arith.constant dense<0xFF800000> : vector<8xf32>
    %69 = vector.multi_reduction <maximumf>, %68, %cst_20 [1] : vector<8x128xf32> to vector<8xf32>
    %70 = vector.shape_cast %69 : vector<8xf32> to vector<8x1xf32>
    %71 = vector.broadcast %70 : vector<8x1xf32> to vector<8x128xf32>
    %72 = arith.subf %68, %71 : vector<8x128xf32>
    %73 = math.exp %72 : vector<8x128xf32>
    %cst_21 = arith.constant dense<0.000000e+00> : vector<8xf32>
    %74 = vector.multi_reduction <add>, %73, %cst_21 [1] : vector<8x128xf32> to vector<8xf32>
    %75 = vector.shape_cast %74 : vector<8xf32> to vector<8x1xf32>
    %76 = math.log %75 : vector<8x1xf32>
    %77 = arith.addf %70, %76 : vector<8x1xf32>
    %78 = arith.subf %77, %39 : vector<8x1xf32>
    %c0_22 = arith.constant 0 : index
    %c126 = arith.constant 126 : index
    %79 = vector.load %arg2[%c0_22, %c126] : memref<8x128xf32, #tpu.memory_space<vmem>>, vector<8x1xf32>
    %c0_23 = arith.constant 0 : index
    %c127 = arith.constant 127 : index
    %80 = vector.load %arg2[%c0_23, %c127] : memref<8x128xf32, #tpu.memory_space<vmem>>, vector<8x1xf32>
    %81 = arith.maximumf %79, %80 : vector<8x1xf32>
    %82 = arith.subf %79, %80 : vector<8x1xf32>
    %83 = math.absf %82 : vector<8x1xf32>
    %cst_24 = arith.constant 0.000000e+00 : f32
    %84 = vector.broadcast %cst_24 : f32 to vector<8x1xf32>
    %85 = arith.subf %84, %83 : vector<8x1xf32>
    %86 = math.exp %85 : vector<8x1xf32>
    %87 = math.log1p %86 : vector<8x1xf32>
    %88 = arith.addf %81, %87 : vector<8x1xf32>
    %c126_i32_25 = arith.constant 126 : i32
    %89 = vector.broadcast %c126_i32_25 : i32 to vector<8x1xi32>
    %90 = arith.cmpi eq, %8, %89 : vector<8x1xi32>
    %91 = arith.select %90, %80, %79 : vector<8x1xi1>, vector<8x1xf32>
    %92 = arith.subf %88, %91 : vector<8x1xf32>
    %93 = arith.mulf %78, %9 : vector<8x1xf32>
    %cst_26 = arith.constant 0.000000e+00 : f32
    %94 = vector.broadcast %cst_26 : f32 to vector<8x1xf32>
    %95 = arith.select %19, %93, %94 : vector<8x1xi1>, vector<8x1xf32>
    %96 = vector.shape_cast %95 : vector<8x1xf32> to vector<1x8x1xf32>
    %cst_27 = arith.constant dense<0.000000e+00> : vector<1xf32>
    %97 = vector.multi_reduction <add>, %96, %cst_27 [1, 2] : vector<1x8x1xf32> to vector<1xf32>
    %98 = vector.shape_cast %97 : vector<1xf32> to vector<1x1x1xf32>
    %99 = vector.extract %98[0, 0, 0] : f32 from vector<1x1x1xf32>
    %100 = arith.mulf %92, %9 : vector<8x1xf32>
    %cst_28 = arith.constant 0.000000e+00 : f32
    %101 = vector.broadcast %cst_28 : f32 to vector<8x1xf32>
    %102 = arith.select %16, %100, %101 : vector<8x1xi1>, vector<8x1xf32>
    %103 = vector.shape_cast %102 : vector<8x1xf32> to vector<1x8x1xf32>
    %cst_29 = arith.constant dense<0.000000e+00> : vector<1xf32>
    %104 = vector.multi_reduction <add>, %103, %cst_29 [1, 2] : vector<1x8x1xf32> to vector<1xf32>
    %105 = vector.shape_cast %104 : vector<1xf32> to vector<1x1x1xf32>
    %106 = vector.extract %105[0, 0, 0] : f32 from vector<1x1x1xf32>
    %cst_30 = arith.constant 1.000000e+00 : f32
    %cst_31 = arith.constant 0.000000e+00 : f32
    %107 = vector.broadcast %cst_30 : f32 to vector<8x1xf32>
    %108 = vector.broadcast %cst_31 : f32 to vector<8x1xf32>
    %109 = arith.select %19, %107, %108 : vector<8x1xi1>, vector<8x1xf32>
    %110 = vector.shape_cast %109 : vector<8x1xf32> to vector<1x8x1xf32>
    %cst_32 = arith.constant dense<0.000000e+00> : vector<1xf32>
    %111 = vector.multi_reduction <add>, %110, %cst_32 [1, 2] : vector<1x8x1xf32> to vector<1xf32>
    %112 = vector.shape_cast %111 : vector<1xf32> to vector<1x1x1xf32>
    %113 = vector.extract %112[0, 0, 0] : f32 from vector<1x1x1xf32>
    %114 = tpu.iota {dimensions = array<i32: 1>} : vector<8x128xi32>
    %c0_i32_33 = arith.constant 0 : i32
    %115 = vector.broadcast %c0_i32_33 : i32 to vector<8x128xi32>
    %116 = arith.cmpi eq, %114, %115 : vector<8x128xi32>
    %cst_34 = arith.constant 0.000000e+00 : f32
    %117 = vector.broadcast %99 : f32 to vector<8x128xf32>
    %118 = vector.broadcast %cst_34 : f32 to vector<8x128xf32>
    %119 = arith.select %116, %117, %118 : vector<8x128xi1>, vector<8x128xf32>
    %c1_i32 = arith.constant 1 : i32
    %120 = vector.broadcast %c1_i32 : i32 to vector<8x128xi32>
    %121 = arith.cmpi eq, %114, %120 : vector<8x128xi32>
    %cst_35 = arith.constant 0.000000e+00 : f32
    %122 = vector.broadcast %106 : f32 to vector<8x128xf32>
    %123 = vector.broadcast %cst_35 : f32 to vector<8x128xf32>
    %124 = arith.select %121, %122, %123 : vector<8x128xi1>, vector<8x128xf32>
    %125 = arith.addf %119, %124 : vector<8x128xf32>
    %c2_i32_36 = arith.constant 2 : i32
    %126 = vector.broadcast %c2_i32_36 : i32 to vector<8x128xi32>
    %127 = arith.cmpi eq, %114, %126 : vector<8x128xi32>
    %cst_37 = arith.constant 0.000000e+00 : f32
    %128 = vector.broadcast %113 : f32 to vector<8x128xf32>
    %129 = vector.broadcast %cst_37 : f32 to vector<8x128xf32>
    %130 = arith.select %127, %128, %129 : vector<8x128xi1>, vector<8x128xf32>
    %131 = arith.addf %125, %130 : vector<8x128xf32>
    %c0_38 = arith.constant 0 : index
    %c0_39 = arith.constant 0 : index
    %132 = vector.load %arg5[%c0_38, %c0_39] : memref<8x128xf32, #tpu.memory_space<vmem>>, vector<8x128xf32>
    %133 = arith.addf %132, %131 : vector<8x128xf32>
    %c0_40 = arith.constant 0 : index
    %c0_41 = arith.constant 0 : index
    %134 = vector.load %arg5[%c0_40, %c0_41] : memref<8x128xf32, #tpu.memory_space<vmem>>, vector<8x128xf32>
    tpu.vector_store %arg5[%c0_40, %c0_41], %133 {strides = array<i32>} : memref<8x128xf32, #tpu.memory_space<vmem>>, vector<8x128xf32>,
    return
  }
  func.func @transform_0(%arg0: i32, %arg1: i32) -> (i32, i32) {
    %c2_i32 = arith.constant 2 : i32
    %0 = arith.muli %arg0, %c2_i32 : i32
    %1 = arith.addi %0, %arg1 : i32
    %c2_i32_0 = arith.constant 2 : i32
    %2 = arith.minsi %1, %c2_i32_0 : i32
    %c0_i32 = arith.constant 0 : i32
    %c0_i32_1 = arith.constant 0 : i32
    return %2, %c0_i32 : i32, i32
  }
  func.func @transform_1(%arg0: i32, %arg1: i32) -> (i32, i32) {
    %c2_i32 = arith.constant 2 : i32
    %0 = arith.muli %arg0, %c2_i32 : i32
    %1 = arith.addi %0, %arg1 : i32
    %c2_i32_0 = arith.constant 2 : i32
    %2 = arith.minsi %1, %c2_i32_0 : i32
    %c0_i32 = arith.constant 0 : i32
    %c0_i32_1 = arith.constant 0 : i32
    return %2, %c0_i32 : i32, i32
  }
  func.func @transform_2(%arg0: i32, %arg1: i32) -> (i32, i32) {
    %c0_i32 = arith.constant 0 : i32
    %c0_i32_0 = arith.constant 0 : i32
    %c0_i32_1 = arith.constant 0 : i32
    return %c0_i32, %c0_i32_0 : i32, i32
  }
  func.func @transform_3(%arg0: i32, %arg1: i32) -> (i32, i32) {
    %c0_i32 = arith.constant 0 : i32
    %c0_i32_0 = arith.constant 0 : i32
    return %arg0, %c0_i32 : i32, i32
  }
}

</mosaic_0001>

<bundles_post_ra>
// kernel: tpu_custom_call.1
= control target key start
LH: loop header
LB: loop body
LE: loop exit
PB: predicated region body
PF: predicated region fallthrough
CT: control target
= control target key end

     0   :  { %8 = vsyncpa [#allocation3], 0  ;;  %s997_s0 = inlined_call_operand.vmem [shape: f32[20,128], index: 0, kind: input, shape index: {}]   ;;  %s998_s1 = inlined_call_operand.vmem [shape: f32[20,2], index: 1, kind: input, shape index: {}]   ;;  %s999_s2 = inlined_call_operand.vmem [shape: f32[8,128], index: 2, kind: input, shape index: {}]   ;;  %s1000_s3 = inlined_call_operand.hbm [shape: f32[16,128], index: 3, kind: output, shape index: {}]  }
   0x1   :  { %10 = vsyncpa [#allocation3 + $0x1], 0  ;;  %s783_s12 = smov 0   ;;  %s785_s13 = smov 0  }
   0x2   :  { %s787_s14 = smov 0   ;;  %s789_s15 = smov 0  }
   0x3   :  { %s791_s16 = smov 0   ;;  %s793_s17 = smov 0  }
   0x4   :  { %s795_s18 = smov 0   ;;  %s797_s19 = smov 0  }
   0x5 LB: > { %s528_s20 = sadd.s32 4294967295, %s752_s19   ;;  %s529_s21 = sadd.s32 4294967294, %s752_s19   ;;  %s752_s19 = sphi %s797_s19, %s16_s19   ;;  %s748_s18 = sphi %s795_s18, %s1013_s18   ;;  %s744_s17 = sphi %s793_s17, %s1012_s17   ;;  %s740_s16 = sphi %s791_s16, %s1011_s16   ;;  %s736_s15 = sphi %s789_s15, %s1010_s15   ;;  %s732_s14 = sphi %s787_s14, %s1009_s14   ;;  %s728_s13 = sphi %s785_s13, %s1008_s13   ;;  %s724_s12 = sphi %s783_s12, %s1007_s12  }
   0x6   : > { %s25_s22 = sadd.s32 1, %s744_s17  ;;  %s28_s23 = sadd.s32 1, %s748_s18 }
   0x7   : > { %p26_p0 = scmp.ge.s32.totalorder %s25_s22, 2  ;;  %p134_p1 = scmp.ne.s32.totalorder %s732_s14, %s728_s13 }
   0x8   : > { %p135_p2 = scmp.eq.s32.totalorder %s528_s20, 3  ;;  %p140_p4 = scmp.ne.s32.totalorder %s728_s13, %s724_s12 }
   0x9   : > { %s1015_s22 = smov (%p26_p0, %s25_s22), 0  ;;  %s1017_s23 = smov (!%p26_p0, %s28_s23), %s748_s18 }
   0xa   : > { %p832_p3 = por %p135_p2, %p134_p1  ;;  %p30_p5 = scmp.ge.s32.totalorder %s1017_s23, 2 }
   0xb   : > { %p141_p6 = scmp.eq.s32.totalorder %s529_s21, 3  ;;  %p536_p7 = scmp.ge.s32.totalorder %s752_s19, 1 }
   0xc   : > { %p192_p8 = scmp.lt.s32.totalorder %s752_s19, 5  ;;  %s1019_s23 = smov (%p30_p5, %s1017_s23), 0 }
   0xd   : > { %p842_p9 = por %p141_p6, %p140_p4  ;;  %s121_s26 = ssub.s32 %s748_s18, %s1019_s23 }
   0xe   : > { %p193_p10 = pnand %p536_p7, %p192_p8  ;;  %s124_s27 = sadd.s32 1, %s732_s14 }
   0xf   : > { %p122_p11 = scmp.eq.s32.totalorder %s121_s26, 0  ;;  %s224_s29 = sand.u32 (!%p193_p10), 1, %s728_s13  }
  0x10   : > { %196 = sbr.rel (%p193_p10) target bundleno = 1159 (0x487), region = 32  ;;  %s538_s30 = sshll.u32 (!%p193_p10), %s740_s16, 1 }
  0x11   : > { %s850_s28 = scalar_select %p122_p11, %s732_s14, %s124_s27  }
  0x12   : > { %s537_s4 = sshll.u32 (!%p193_p10), %s224_s29, 3  ;;  %s228_s5 = sadd.s32 (!%p193_p10), %s736_s15, %s538_s30 }
  0x13   : > { %p229_p12 = scmp.lt.s32.totalorder (!%p193_p10), %s228_s5, 2  ;;  %s863_s26 = scalar_lea.vmem (!%p193_p10), [#allocation2], %s537_s4 }
  0x14   : > { %p548_p13 = scmp.ne.s32.totalorder (!%p193_p10), %s736_s15, 0 }
  0x17   : > { %s230_s6 = scalar_select %p229_p12, %s228_s5, 2 }
  0x18   : > { %254 = sbr.rel (%p548_p13) target bundleno = 31 (0x1f), region = 36  ;;  %v754_v0 = vmov (!%p548_p13), 0.0  }
  0x19   : > { %s1021_s6 = smov (!%p229_p12, %s230_s6), 2  ;;  %255 = vst [vmem:[%s863_s26] sm:$0xff] (!%p548_p13), %v754_v0 }
  0x1a   : > { %s542_s7 = sshll.u32 %s1021_s6, 3 }
  0x1b   : > { %s234_s10 = scalar_lea.vmem %s997_s0, %s542_s7  ;;  %s246_s21 = scalar_lea.vmem %s998_s1, %s542_s7 }
  0x1f PF: > { %v867_v1 = vld [vmem:[%s234_s10] sm:$0xff]  ;;  %s550_s6 = sshll.u32 %s228_s5, 3  ;;  %v264_v4 = vlaneseq  ;;  %v755_v6 = vmov 0   ;;  %s756_s5 = smov 1   ;;  %vm376_vm8 = vcmask 7168  }
  0x20   : > { %v551_v2 = vld [vmem:[%s999_s2 + $0x1] ss:$0 sm:$0xff]  ;;  %645 = vset.pattern.permute.xlu1 %v755_v6  ;;  %644 = vset.pattern.permute.xlu0 %v755_v6  ;;  %v266_v8 = vstv %s550_s6  ;;  %v552_v23 = vld [vmem:[%s999_s2] ss:$0 sm:$0xff]  ;;  %s757_s7 = smov 127   ;;  %s758_s8 = smov 2  }
  0x21   : > { %v872_v3 = vld [vmem:[%s246_s21] sm:$0xff]  ;;  %v287_v5 = vadd.f32 %v551_v2, %v867_v1  ;;  %v265_v9 = vshrl.u32 %v264_v4, 7  ;;  %v891_v17 = vand.u32 127, %v264_v4  ;;  %s759_s9 = smov 126   ;;  %s760_s10 = smov 125  }
  0x22   : > { %v557_v7 = vtrunc.f32 %v872_v3  ;;  %s554_s27 = sshll.u32 %s740_s16, 7  ;;  %s446_s30 = sshll.u32 %s863_s26, 4  ;;  %s943_s30 = int_to_ptr.vmem [resolvable:$true] %s446_s30 }
  0x23   : > { %288 = vmax.xlane.f32.xlu0 %v287_v5  ;;  %v878_v11 = vadd.s32 %v266_v8, %v265_v9  ;;  %vm421_vm9 = vcmp.eq.s32.totalorder %v891_v17, 1  ;;  %vm418_vm10 = vcmp.eq.s32.totalorder %v891_v17, 0  ;;  %vm425_vm11 = vcmp.eq.s32.totalorder %v891_v17, 2  ;;  %s941_s4 = scalar_lea.hbm %s1000_s3, %s554_s27  ;;  %s762_s16 = smov [#allocation2]  }
  0x24   : > { %v876_v10 = vcvt.f32.s32 %v557_v7 }
  0x25   : > { %vm268_vm1 = vcmp.lt.s32.totalorder %v878_v11, 20 }
  0x26   : > { %vm269_vm0 = vcmp.lt.s32.totalorder %v876_v10, 126  ;;  %vm357_vm6 = vcmp.eq.s32.totalorder %v876_v10, 126 }
  0x27   : > { %vm884_vm2 = vmand %vm269_vm0, %vm268_vm1 }
  0x28   : > { %v277_v13 = vsel %vm884_vm2, 1, %v755_v6 }
  0x29   : > { %279 = vperm.xlu1 %645, %v277_v13  }
  0x39   : > { %274 = vperm.xlu0 %644, %v876_v10  }
  0xa8   : > { %v280_v19 = vpop.permute.xlu1 %279 }
  0xa9   : > { %vm281_vm4 = vcmp.eq.s32.totalorder %v280_v19, 1 }
  0xb0   : > { %v289_v14 = vpop.xlane.xlu0 %288 }
  0xb1   : > { %v290_v15 = vsub.f32 %v287_v5, %v289_v14 }
  0xb3   : > { %v291_v16 = vmul.f32 1.442695, %v290_v15 }
  0xb5   : > { %646 = vpow2.f32 %v291_v16 }
  0xb8   : > { %v275_v18 = vpop.permute.xlu0 %274 }
  0xb9   : > { %vm276_vm3 = vcmp.eq.s32.totalorder %v891_v17, %v275_v18 }
  0xba   : > { %vm894_vm5 = vmand %vm276_vm3, %vm281_vm4 }
  0xbb   : > { %v298_v22 = vsel %vm894_vm5, %v867_v1, 0.0  ;;  %v305_v24 = vsel %vm894_vm5, %v552_v23, 0.0 }
  0xbf   : > { %v647_v21 = vpop.eup %646 }
  0xc0   : > { %293 = vadd.xlane.f32.xlu1 %v647_v21 }
  0xc4   : > { %299 = vadd.xlane.f32.xlu1 %v298_v22 }
  0xc8   : > { %306 = vadd.xlane.f32.xlu1 %v305_v24 }
 0x14d   : > { %v294_v25 = vpop.xlane.xlu1 %293 }
 0x14e   : > { %648 = vlog2.f32 %v294_v25 }
 0x151   : > { %v906_v29 = vpop.xlane.xlu1 %299 }
 0x155   : > { %v307_v33 = vpop.xlane.xlu1 %306 }
 0x156   : > { %v311_v34 = vsub.f32 %v552_v23, %v307_v33  ;;  %v761_v23 = vmov 0.0  }
 0x158   : > { %v649_v26 = vpop.eup %648  ;;  %v312_v37 = vmin.f32 %v311_v34, 0.0 }
 0x159   : > { %v296_v27 = vmul.f32 0.6931472, %v649_v26 }
 0x15a   : > { %v313_v40 = vmul.f32 0.8, %v312_v37 }
 0x15b   : > { %v297_v28 = vadd.f32 %v296_v27, %v289_v14 }
 0x15d   : > { %v308_v30 = vsub.f32 %v906_v29, %v297_v28  ;;  %v314_v35 = vsub.f32 %v287_v5, %v297_v28 }
 0x15f   : > { %v309_v31 = vsel %vm884_vm2, %v308_v30, 0.0 }
 0x160   : > { %v310_v32 = vmax.f32 %v309_v31, -4.6051702 }
 0x162   : > { %317 = vperm.xlu0 %644, %v310_v32  }
 0x166   : > { %358 = vrot.lane.b32.xlu0 %v867_v1, %s756_s5  ;;  %s433_s5 = scalar_lea.sflag [#allocation3], %s224_s29 }
 0x16a   : > { %338 = vrot.lane.b32.xlu0 %v867_v1, %s757_s7 }
 0x1e1   : > { %v318_v36 = vpop.permute.xlu0 %317 }
 0x1e2   : > { %v320_v38 = vsub.f32 %v314_v35, %v318_v36 }
 0x1e4   : > { %v321_v39 = vmax.f32 %v320_v38, 0.0 }
 0x1e5   : > { %v359_v47 = vpop.permute.xlu0 %358 }
 0x1e6   : > { %v322_v41 = vmul.f32 2.0, %v321_v39 }
 0x1e8   : > { %v323_v42 = vadd.f32 %v322_v41, %v313_v40 }
 0x1e9   : > { %v339_v52 = vpop.permute.xlu0 %338 }
 0x1ea   : > { %v324_v43 = vadd.f32 %v323_v42, %v287_v5  ;;  %v342_v53 = vsub.f32 %v867_v1, %v339_v52  ;;  %v341_v6 = vmax.f32 %v867_v1, %v339_v52  ;;  %v429_v52 = vld [vmem:[%s863_s26] sm:$0xff] }
 0x1ec   : > { %v325_v44 = vsel %vm894_vm5, %v287_v5, %v324_v43  ;;  %v343_v54 = vand.u32 2147483647, %v342_v53 }
 0x1ed   : > { %326 = vmax.xlane.f32.xlu1 %v325_v44 }
 0x1ee   : > { %v344_v55 = vsub.f32 0.0, %v343_v54 }
 0x1f0   : > { %v345_v56 = vmul.f32 1.442695, %v344_v55 }
 0x1fe   : > { %361 = vrot.lane.b32.xlu1 %v867_v1, %s758_s8 }
 0x27a   : > { %v327_v45 = vpop.xlane.xlu1 %326 }
 0x27b   : > { %v328_v46 = vsub.f32 %v325_v44, %v327_v45 }
 0x27d   : > { %v329_v48 = vmul.f32 1.442695, %v328_v46 }
 0x27e   : > { %v362_v49 = vpop.permute.xlu1 %361 }
 0x27f   : > { %650 = vpow2.f32 %v329_v48  ;;  %v364_v50 = vsel %vm357_vm6, %v359_v47, %v362_v49 }
 0x280   : > { %366 = vrot.lane.b32.xlu1 %v364_v50, %s759_s9  ;;  %652 = vpow2.f32 %v345_v56 }
 0x284   : > { %388 = vrot.lane.b32.xlu1 %v872_v3, %s760_s10 }
 0x289   : > { %v651_v51 = vpop.eup %650 }
 0x28a   : > { %331 = vadd.xlane.f32.xlu0 %v651_v51  ;;  %v653_v57 = vpop.eup %652 }
 0x28b   : > { %v347_v58 = vadd.f32 1.0, %v653_v57  ;;  %v350_v59 = vmul.f32 -0.5, %v653_v57  ;;  %v353_v63 = vand.u32 2147483647, %v653_v57 }
 0x28d   : > { %654 = vlog2.f32 %v347_v58  ;;  %v351_v61 = vadd.f32 1.0, %v350_v59  ;;  %vm354_vm7 = vcmp.lt.f32.partialorder %v353_v63, 0.0004427343 }
 0x28f   : > { %v352_v2 = vmul.f32 %v653_v57, %v351_v61 }
 0x297   : > { %v655_v62 = vpop.eup %654 }
 0x298   : > { %v349_v0 = vmul.f32 0.6931472, %v655_v62 }
 0x29a   : > { %v355_v7 = vsel %vm354_vm7, %v352_v2, %v349_v0 }
 0x29b   : > { %v356_v10 = vadd.f32 %v355_v7, %v341_v6 }
 0x2f2   : > { %v367_v4 = vpop.permute.xlu1 %366 }
 0x2f3   : > { %v369_v15 = vsub.f32 %v356_v10, %v367_v4 }
 0x2f6   : > { %v389_v13 = vpop.permute.xlu1 %388 }
 0x2f7   : > { %v391_v18 = vmul.f32 %v389_v13, %v369_v15 }
 0x2f9   : > { %v392_v19 = vsel %vm268_vm1, %v391_v18, 0.0 }
 0x317   : > { %v332_v60 = vpop.xlane.xlu0 %331 }
 0x318   : > { %656 = vlog2.f32 %v332_v60 }
 0x322   : > { %v657_v5 = vpop.eup %656 }
 0x323   : > { %v334_v8 = vmul.f32 0.6931472, %v657_v5 }
 0x325   : > { %v335_v9 = vadd.f32 %v334_v8, %v327_v45 }
 0x327   : > { %v336_v14 = vsub.f32 %v335_v9, %v906_v29 }
 0x329   : > { %v370_v16 = vmul.f32 %v336_v14, %v872_v3  ;;  %v407_v3 = vsel %vm884_vm2, 1.0, %v761_v23 }
 0x32a   : > { %v408_v25 = vsel %vm376_vm8, %v407_v3, 0.0 }
 0x32b   : > { %372 = vrot.lane.b32.xlu1 %v370_v16, %s757_s7  ;;  %s658_s7 = scalar_lea.vmem %s943_s30, 128 }
 0x32c   : > { %p659_p0 = scmp.ne.s32.totalorder %s943_s30, %s658_s7 }
 0x32e   : > { %p660_p1 = pnand %p659_p0, %p832_p3 }
 0x32f   : > { %394 = vrot.lane.b32.xlu1 %v392_v19, %s758_s8  ;;  %s662_s8 = sshll.u32 %s762_s16, 4  ;;  %s663_s8 = int_to_ptr.vmem [resolvable:$false] %s662_s8 }
 0x330   : > { %p661_p2 = pneg %p660_p1  ;;  %s664_s9 = scalar_lea.vmem %s663_s8, 256 }
 0x331   : > { %p665_p4 = scmp.lt.s32.totalorder %s943_s30, %s663_s8  ;;  %p666_p5 = scmp.lt.s32.totalorder %s664_s9, %s658_s7 }
 0x333   : > { %p667_p6 = por %p666_p5, %p665_p4 }
 0x335   : > { %p668_p7 = pnand %p667_p6, %p661_p2 }
 0x39d   : > { %v373_v1 = vpop.permute.xlu1 %372 }
 0x39e   : > { %v375_v20 = vsel %vm884_vm2, %v373_v1, 0.0 }
 0x39f   : > { %v377_v21 = vsel %vm376_vm8, %v375_v20, 0.0 }
 0x3a0   : > { %378 = vadd.xlane.f32.xlu1 %v377_v21 }
 0x3a1   : > { %v395_v22 = vpop.permute.xlu1 %394 }
 0x3a2   : > { %v397_v24 = vsel %vm376_vm8, %v395_v22, 0.0 }
 0x3a3   : > { %398 = vadd.xlane.f32.xlu0 %v397_v24 }
 0x3a7   : > { %409 = vadd.xlane.f32.xlu0 %v408_v25 }
 0x42d   : > { %v379_v11 = vpop.xlane.xlu1 %378 }
 0x42e   : > { %v380_v26 = vrot.slane %v379_v11, 4 }
 0x430   : > { %v381_v27 = vadd.f32 %v380_v26, %v379_v11  ;;  %v399_v28 = vpop.xlane.xlu0 %398 }
 0x431   : > { %v400_v29 = vrot.slane %v399_v28, 4 }
 0x432   : > { %v382_v30 = vrot.slane %v381_v27, 2 }
 0x433   : > { %v401_v31 = vadd.f32 %v400_v29, %v399_v28 }
 0x434   : > { %v410_v32 = vpop.xlane.xlu0 %409  ;;  %v383_v33 = vadd.f32 %v382_v30, %v381_v27 }
 0x435   : > { %v402_v34 = vrot.slane %v401_v31, 2  ;;  %v411_v35 = vrot.slane %v410_v32, 4 }
 0x436   : > { %v384_v36 = vrot.slane %v383_v33, 1 }
 0x437   : > { %v412_v37 = vadd.f32 %v411_v35, %v410_v32  ;;  %v403_v38 = vadd.f32 %v402_v34, %v401_v31 }
 0x438   : > { %v385_v12 = vadd.f32 %v384_v36, %v383_v33 }
 0x439   : > { %v413_v39 = vrot.slane %v412_v37, 2  ;;  %v404_v40 = vrot.slane %v403_v38, 1 }
 0x43a   : > { %559 = vpush %v385_v12 }
 0x43b   : > { %v414_v41 = vadd.f32 %v413_v39, %v412_v37  ;;  %v405_v42 = vadd.f32 %v404_v40, %v403_v38 }
 0x43d   : > { %561 = vpush %v405_v42  ;;  %v415_v43 = vrot.slane %v414_v41, 1 }
 0x43f   : > { %v416_v44 = vadd.f32 %v415_v43, %v414_v41 }
 0x441   : > { %563 = vpush %v416_v44 }
 0x46b   : > { %s560_s11 = spop %559 }
 0x46c   : > { %v419_v45 = vstv %s560_s11 }
 0x46d   : > { %v420_v48 = vsel %vm418_vm10, %v419_v45, 0.0 }
 0x46e   : > { %s562_s20 = spop %561 }
 0x46f   : > { %v422_v46 = vstv %s562_s20 }
 0x470   : > { %v423_v47 = vsel %vm421_vm9, %v422_v46, 0.0 }
 0x471   : > { %v424_v49 = vadd.f32 %v423_v47, %v420_v48 }
 0x472   : > { %s564_s21 = spop %563 }
 0x473   : > { %v426_v50 = vstv %s564_s21 }
 0x474   : > { %v427_v51 = vsel %vm425_vm11, %v426_v50, 0.0 }
 0x475   : > { %v428_v53 = vadd.f32 %v427_v51, %v424_v49 }
 0x477   : > { %v430_v54 = vadd.f32 %v429_v52, %v428_v53 }
 0x479   : > { %431 = vst [vmem:[%s863_s26] sm:$0xff] %v430_v54 }
 0x47a   : > { %671 = shalt.err (!%p668_p7)
}
 0x47b   : > { %s672_s29 = scalar_lea.hbm %s941_s4, 128  ;;  %s676_s11 = scalar_lea.hbm %s1000_s3, 256 }
 0x47c   : > { %p673_p8 = scmp.ne.s32.totalorder %s941_s4, %s672_s29  ;;  %p677_p12 = scmp.lt.u32.totalorder %s941_s4, %s1000_s3 }
 0x47d   : > { %p678_p13 = scmp.lt.u32.totalorder %s676_s11, %s672_s29  ;;  %p680_p1 = scmp.lt.u32.totalorder %s672_s29, %s941_s4 }
 0x47e   : > { %p674_p10 = pnand %p673_p8, %p832_p3 }
 0x47f   : > { %p679_p0 = por %p678_p13, %p677_p12 }
 0x480   : > { %p675_p11 = pneg %p674_p10 }
 0x481   : > { %p681_p2 = por %p680_p1, %p679_p0 }
 0x483   : > { %p682_p4 = pnand %p681_p2, %p675_p11 }
 0x485   : > { %685 = shalt.err (!%p682_p4)
}
 0x486   : > { %565 = dma.vmem_to_hbm [thread:$0]  (%p832_p3), %s943_s30, 128, %s941_s4, %s433_s5  }
 0x487 PF: > { %p571_p5 = scmp.ge.s32.totalorder %s752_s19, 2  ;;  %s458_s27 = sand.u32 1, %s724_s12  }
 0x488   : > { %s459_s6 = scalar_lea.sflag [#allocation3], %s458_s27 }
 0x489   : > { %p568_p6 = pnand %p571_p5, %p842_p9 }
 0x48b   : > { %719 = dma.done.wait (!%p568_p6), %s459_s6, 128  }
 0x48c   : > { %721 = vsyncadd (!%p568_p6), %s459_s6, 4294967168  ;;  %s16_s19 = sadd.s32 1, %s752_s19   ;;  %s1007_s12 = smov %s728_s13 }
 0x48d   : > { %p13_p7 = scmp.ge.s32.totalorder %s16_s19, 6   ;;  %s1008_s13 = smov %s732_s14 }
 0x48e   : > { %s1009_s14 = smov %s850_s28  ;;  %s1010_s15 = smov %s744_s17 }
 0x48f   : > { %s1011_s16 = smov %s748_s18  ;;  %s1012_s17 = smov %s1015_s22 }
 0x490   : > { %s1013_s18 = smov %s1019_s23  ;;  %15 = sbr.rel (!%p13_p7) target bundleno = 5 (0x5), region = 74 }
 0x497   :  { %464 = vsyncpa [#allocation3], 1 }
 0x498   :  { %466 = vsyncpa [#allocation3 + $0x1], 1 }

</bundles_post_ra>
